<compile_context>
chip_gen: v7x
topology: tpu7x:2x2x1
jax: 0.10.0
libtpu: 0.0.40
codegen_flags: <defaults>
</compile_context>

<pallas_src>
import jax
import jax.numpy as jnp
from jax import lax
from jax.experimental import pallas as pl
from jax.experimental.pallas import tpu as pltpu


def linear_kernel(x_ref, w_ref, b_ref, o_ref):
    x = x_ref[...]                      # (B, IN)   f32
    w = w_ref[...]                      # (OUT, IN) f32 — PyTorch layout, used as-is
    b = b_ref[...]                      # (1, OUT)  f32
    # x (B, K) contracted with w (N, K) over K -> (B, N).  The MXU handles this
    # orientation directly, so no transposed weight copy is needed anywhere.
    acc = lax.dot_general(
        x, w,
        dimension_numbers=(((1,), (1,)), ((), ())),
        preferred_element_type=jnp.float32,
    )                                   # (B, OUT)
    o_ref[...] = (acc + b).astype(o_ref.dtype)


def dummy_model_forward(x, weight, bias):
    """Equivalent of nn.Linear(in_channels, out_channels) forward.

    x:      (B, IN)   float32
    weight: (OUT, IN) float32   (PyTorch layout, used as-is)
    bias:   (OUT,)    float32
    """
    B, IN = x.shape
    OUT = weight.shape[0]
    b2d = bias.reshape(1, OUT)          # 2-D for TPU vreg layout (metadata-only)

    return pl.pallas_call(
        linear_kernel,
        out_shape=jax.ShapeDtypeStruct((B, OUT), x.dtype),
        # No grid: single kernel invocation, whole arrays resident in VMEM.
        in_specs=[
            pl.BlockSpec(memory_space=pltpu.MemorySpace.VMEM),
            pl.BlockSpec(memory_space=pltpu.MemorySpace.VMEM),
            pl.BlockSpec(memory_space=pltpu.MemorySpace.VMEM),
        ],
        out_specs=pl.BlockSpec(memory_space=pltpu.MemorySpace.VMEM),
    )(x, weight, b2d)


if __name__ == "__main__":
    IN_CHANNELS = 120
    OUT_CHANNELS = 2
    BATCH = 8

    key = jax.random.PRNGKey(0)
    kx, kw, kb = jax.random.split(key, 3)

    # Deterministic parameter init (nn.Linear shapes: W (out, in), b (out,)).
    bound = 1.0 / (IN_CHANNELS ** 0.5)
    weight = jax.random.uniform(
        kw, (OUT_CHANNELS, IN_CHANNELS), jnp.float32, -bound, bound)
    bias = jax.random.uniform(
        kb, (OUT_CHANNELS,), jnp.float32, -bound, bound)

    x = jax.random.normal(kx, (BATCH, IN_CHANNELS), jnp.float32)

    out = dummy_model_forward(x, weight, bias)
    out = jax.block_until_ready(out)

    # Reference check against plain JAX (same math as torch nn.Linear).
    ref = x @ weight.T + bias
    assert out.shape == (BATCH, OUT_CHANNELS)
    assert jnp.allclose(out, ref, atol=1e-5, rtol=1e-5)

    print("KERNEL_OK")
</pallas_src>

<mosaic_0001>
module attributes {stable_mosaic.version = 11 : i64} {
  func.func @linear_kernel(%arg0: memref<8x120xf32, #tpu.memory_space<vmem>>, %arg1: memref<2x120xf32, #tpu.memory_space<vmem>>, %arg2: memref<1x2xf32, #tpu.memory_space<vmem>>, %arg3: memref<8x2xf32, #tpu.memory_space<vmem>>) attributes {dimension_semantics = [], scalar_prefetch = 0 : i64, scratch_operands = 0 : i64, tpu.core_type = #tpu.core_type<tc>} {
    %c0 = arith.constant 0 : index
    %c0_0 = arith.constant 0 : index
    %0 = vector.load %arg0[%c0, %c0_0] : memref<8x120xf32, #tpu.memory_space<vmem>>, vector<8x120xf32>
    %c0_1 = arith.constant 0 : index
    %c0_2 = arith.constant 0 : index
    %1 = vector.load %arg1[%c0_1, %c0_2] : memref<2x120xf32, #tpu.memory_space<vmem>>, vector<2x120xf32>
    %c0_3 = arith.constant 0 : index
    %c0_4 = arith.constant 0 : index
    %2 = vector.load %arg2[%c0_3, %c0_4] : memref<1x2xf32, #tpu.memory_space<vmem>>, vector<1x2xf32>
    %cst = arith.constant dense<0.000000e+00> : vector<8x2xf32>
    %3 = tpu.matmul %0, %1, %cst {dimension_numbers = #tpu.dot_dimension_numbers<[1], [1], [0], [0], [0, 0, 1, 0], [], []>} : vector<8x120xf32>, vector<2x120xf32>, vector<8x2xf32> -> vector<8x2xf32>
    %4 = vector.broadcast %2 : vector<1x2xf32> to vector<8x2xf32>
    %5 = arith.addf %3, %4 : vector<8x2xf32>
    %c0_5 = arith.constant 0 : index
    %c0_6 = arith.constant 0 : index
    %6 = vector.load %arg3[%c0_5, %c0_6] : memref<8x2xf32, #tpu.memory_space<vmem>>, vector<8x2xf32>
    tpu.vector_store %arg3[%c0_5, %c0_6], %5 {strides = array<i32>} : memref<8x2xf32, #tpu.memory_space<vmem>>, vector<8x2xf32>,
    return
  }
}

</mosaic_0001>

<bundles_post_ra>
// kernel: tpu_custom_call.1
= control target key start
LH: loop header
LB: loop body
LE: loop exit
PB: predicated region body
PF: predicated region fallthrough
CT: control target
= control target key end

     0   :  { %8 = vsyncpa [#allocation3], 0  ;;  %s156_s12 = smov [#allocation2]   ;;  %s200_s0 = inlined_call_operand.hbm [shape: f32[8,120], index: 0, kind: input, shape index: {}]   ;;  %s201_s1 = inlined_call_operand.vmem [shape: f32[2,120], index: 1, kind: input, shape index: {}]   ;;  %s202_s2 = inlined_call_operand.vmem [shape: f32[1,2], index: 2, kind: input, shape index: {}]   ;;  %s203_s3 = inlined_call_operand.vmem [shape: f32[8,2], index: 3, kind: output, shape index: {}]  }
   0x1   :  { %s15_s13 = sshll.u32 %s156_s12, 4  ;;  %s132_s16 = scalar_lea.hbm %s200_s0, 128  ;;  %s16_s13 = int_to_ptr.vmem [resolvable:$true] %s15_s13 }
   0x2   :  { %p133_p0 = scmp.ne.s32.totalorder %s200_s0, %s132_s16  ;;  %p136_p1 = scmp.lt.u32.totalorder %s132_s16, %s200_s0 }
   0x4   :  { %p138_p2 = pnand %p136_p1, %p133_p0 }
   0x6   :  { %141 = shalt.err (!%p138_p2)
}
   0x7   :  { %s142_s21 = scalar_lea.vmem %s16_s13, 128  ;;  %p147_p4 = scmp.lt.s32.totalorder %s16_s13, %s16_s13 }
   0x8   :  { %p143_p3 = scmp.ne.s32.totalorder %s16_s13, %s142_s21  ;;  %p148_p5 = scmp.lt.s32.totalorder %s142_s21, %s142_s21 }
   0xa   :  { %p149_p6 = por %p148_p5, %p147_p4 }
   0xc   :  { %p150_p7 = pnand %p149_p6, %p143_p3 }
   0xe   :  { %153 = shalt.err (!%p150_p7)
}
   0xf   :  { %18 = dma.hbm_to_vmem [thread:$0]  %s200_s0, 128, %s16_s13, [#allocation3]  }
  0x10   :  { %154 = dma.done.wait [#allocation3], 128  }
  0x11   :  { %155 = vsyncadd [#allocation3], 4294967168  ;;  %v157_v0 = vmov 0.0   ;;  %vm158_vm0 = vmmov 0   ;;  %vm35_vm1 = vcmask 982016   ;;  %v26_v2 = vld [vmem:[#allocation2] sm:$0xff] }
  0x12   :  { %124 = vmatprep.subr.mxu0 %v157_v0  ;;  %126 = vmatprep.mubr.msk.f32.mxu0 %vm158_vm0, %v157_v0  ;;  %v27_v1 = vld [vmem:[%s201_s1] sm:$0x3]  ;;  %vm112_vm2 = vcmask 15360  }
  0x13   :  { %125 = vmatpush3.xpose.msk.msra.mxu0 %vm35_vm1, %v27_v1  ;;  %v119_v3 = vld [vmem:[%s202_s2] ss:$0 sm:$0xff] }
  0x16   :  { %127 = vmatmul.mubr.msk.f32.vlgmr.msra.gmra.mrb[0].mxu0 %vm35_vm1, %v26_v2 }
  0xe9   :  { %v108_v4 = vpop.f32.mrb[0].mxu0 }
  0xea   :  { %v109_v5 = vadd.f32 %v119_v3, %v108_v4  ;;  %v128_v6 = vpop.f32.mrb[1].mxu0 }
  0xec   :  { %113 = vst.msk [vmem:[%s203_s3] sm:$0xff] %vm112_vm2, %v109_v5 }
  0xed   :  { %118 = vsyncpa [#allocation3], 1 }

</bundles_post_ra>
